<compile_context>
chip_gen: v7x
topology: tpu7x:2x2x1
jax: 0.10.0
libtpu: 0.0.40
codegen_flags: <defaults>
</compile_context>

<pallas_src>
import jax
import jax.numpy as jnp
from jax.experimental import pallas as pl
from jax.experimental.pallas import tpu as pltpu


KER = 3                # kernel size (fixed in the module)
PAD_LEFT = 2           # ConstantPad1d((2, 0), 0)
NEG_SLOPE = 0.2        # LeakyReLU negative slope
DEFAULT_TILE_L = 1024  # lane-dense length tile (multiple of 128) for long sequences


def _make_fused_kernel(n_layers, tl):
    """Kernel processing one (batch, length-tile) block through all conv stages.

    refs layout:
      refs[0]                      : x block        (1, C0, TL)
      refs[1 : 1+2*n_layers]       : w_i (3, Ci+1, Ci), b_i (Ci+1, 1) interleaved
      refs[1+2*n_layers]           : out block      (1, C_last, TL)
      refs[2+2*n_layers : ]        : per-layer carry scratch (Ci, 2) in VMEM
    """

    def kernel(*refs):
        x_ref = refs[0]
        wb_refs = refs[1:1 + 2 * n_layers]
        w_refs = wb_refs[0::2]
        b_refs = wb_refs[1::2]
        o_ref = refs[1 + 2 * n_layers]
        carry_refs = refs[2 + 2 * n_layers:]

        # First length tile of a batch row: causal history is the zero pad.
        @pl.when(pl.program_id(1) == 0)
        def _():
            for cr in carry_refs:
                cr[...] = jnp.zeros_like(cr)

        h = x_ref[0].astype(jnp.float32)                 # (C_in, TL), length on lanes
        for i in range(n_layers):
            carry = carry_refs[i][...]                   # (C_i, 2): last 2 cols of prev tile
            # Save causal history for the NEXT length tile of this batch row.
            carry_refs[i][...] = h[:, tl - PAD_LEFT:]
            # Causally shifted activations along the lane (length) axis:
            #   sh1[:, t] = x[t-1],  sh2[:, t] = x[t-2]   (zero / prev-tile at the edge)
            sh1 = jnp.concatenate([carry[:, 1:2], h[:, : tl - 1]], axis=1)
            sh2 = jnp.concatenate([carry[:, 0:2], h[:, : tl - 2]], axis=1)

            w = w_refs[i]                                # ref (3, C_out, C_i)
            acc = jnp.dot(w[2], h, preferred_element_type=jnp.float32)
            acc = acc + jnp.dot(w[1], sh1, preferred_element_type=jnp.float32)
            acc = acc + jnp.dot(w[0], sh2, preferred_element_type=jnp.float32)
            acc = acc + b_refs[i][...]                   # (C_out, 1) broadcast over lanes
            h = jnp.maximum(acc, NEG_SLOPE * acc)        # LeakyReLU(0.2)
        o_ref[0] = h.astype(o_ref.dtype)

    return kernel


def first_layer_forward(x_ncl, params, *, tile_l=DEFAULT_TILE_L, interpret=False):
    """Fused Pallas forward of `first_layer`.

    x_ncl : (N, feature_size, L)  — PyTorch NCL layout, unchanged.
    params: list of (w, b) with PyTorch Conv1d shapes w: (out, in, 3), b: (out,)
    returns (N, num_convs[-1], L)
    """
    N, c_in, L = x_ncl.shape
    n_layers = len(params)
    out_ch = params[-1][0].shape[0]
    if L < PAD_LEFT:
        raise ValueError("sequence length must be >= 2")

    # Largest lane-dense tile that respects the (., 128) rule: either the full
    # length (any L) or a multiple-of-128 tile for long sequences.
    if L <= tile_l:
        tl = L
    else:
        tl = max(128, (tile_l // 128) * 128)
    num_tiles = pl.cdiv(L, tl)

    # Pack per-layer weights as per-tap matrices: w_taps[k] = w[:, :, k]  (Cout, Cin)
    flat_inputs = [x_ncl]
    in_specs = [pl.BlockSpec((1, c_in, tl), lambda n, j: (n, 0, j))]
    scratch_shapes = []
    layer_cin = c_in
    for (w, bias) in params:
        cout, cin, ker = w.shape
        assert ker == KER and cin == layer_cin
        w_taps = jnp.transpose(w, (2, 0, 1)).astype(jnp.float32)   # (KER, Cout, Cin)
        b2 = bias.reshape(cout, 1).astype(jnp.float32)
        flat_inputs += [w_taps, b2]
        in_specs += [
            pl.BlockSpec((KER, cout, cin), lambda n, j: (0, 0, 0)),
            pl.BlockSpec((cout, 1), lambda n, j: (0, 0)),
        ]
        scratch_shapes.append(pltpu.VMEM((cin, PAD_LEFT), jnp.float32))
        layer_cin = cout

    kernel = _make_fused_kernel(n_layers, tl)

    return pl.pallas_call(
        kernel,
        out_shape=jax.ShapeDtypeStruct((N, out_ch, L), x_ncl.dtype),
        grid_spec=pltpu.PrefetchScalarGridSpec(
            num_scalar_prefetch=0,
            grid=(N, num_tiles),
            in_specs=in_specs,
            out_specs=pl.BlockSpec((1, out_ch, tl), lambda n, j: (n, 0, j)),
            scratch_shapes=scratch_shapes,
        ),
        compiler_params=pltpu.CompilerParams(
            # length tiles carry state -> sequential; batch can use megacore.
            dimension_semantics=("parallel", "arbitrary")),
        interpret=interpret,
    )(*flat_inputs)


def init_first_layer_params(key, feature_size, num_convs):
    """Deterministic synthetic init of Conv1d weights/biases (PyTorch shapes)."""
    params = []
    in_ch = feature_size
    for out_ch in num_convs:
        key, kw, kb = jax.random.split(key, 3)
        w = jax.random.normal(kw, (out_ch, in_ch, KER), jnp.float32) * 0.1   # (out, in, k)
        bias = jax.random.normal(kb, (out_ch,), jnp.float32) * 0.1
        params.append((w, bias))
        in_ch = out_ch
    return params


def _reference_forward(x_ncl, params):
    """Pure-JAX reference mirroring the PyTorch semantics."""
    x = x_ncl
    for w, bias in params:
        xp = jnp.pad(x, ((0, 0), (0, 0), (PAD_LEFT, 0)))   # (N, Cin, L+2)
        L = x.shape[-1]
        out = jnp.zeros((x.shape[0], w.shape[0], L), jnp.float32)
        for k in range(KER):
            out = out + jnp.einsum('oc,ncl->nol', w[:, :, k], xp[:, :, k:k + L])
        out = out + bias[None, :, None]
        x = jnp.where(out >= 0, out, NEG_SLOPE * out)
    return x


if __name__ == "__main__":
    key = jax.random.PRNGKey(0)
    key, kx = jax.random.split(key)

    batch, feature_size, seq_len = 2, 4, 16
    num_convs = [8, 16]

    x = jax.random.normal(kx, (batch, feature_size, seq_len), jnp.float32)
    params = init_first_layer_params(key, feature_size, num_convs)

    out = jax.block_until_ready(first_layer_forward(x, params))
    ref = _reference_forward(x, params)
    assert out.shape == (batch, num_convs[-1], seq_len), out.shape
    assert jnp.allclose(out, ref, atol=1e-4, rtol=1e-3), "mismatch vs reference"

    # Exercise the length-tiled path: multiple tiles, a partial last tile, and
    # the cross-tile causal carry.
    key, kx2 = jax.random.split(key)
    seq_len2 = 320
    x2 = jax.random.normal(kx2, (batch, feature_size, seq_len2), jnp.float32)
    out2 = jax.block_until_ready(first_layer_forward(x2, params, tile_l=128))
    ref2 = _reference_forward(x2, params)
    assert out2.shape == (batch, num_convs[-1], seq_len2), out2.shape
    assert jnp.allclose(out2, ref2, atol=1e-4, rtol=1e-3), "mismatch vs reference (tiled)"

    print("KERNEL_OK")
</pallas_src>

<mosaic_0001>
module attributes {stable_mosaic.version = 11 : i64} {
  func.func @kernel(%arg0: i32, %arg1: i32, %arg2: memref<1x4x16xf32, #tpu.memory_space<vmem>>, %arg3: memref<3x8x4xf32, #tpu.memory_space<vmem>>, %arg4: memref<8x1xf32, #tpu.memory_space<vmem>>, %arg5: memref<3x16x8xf32, #tpu.memory_space<vmem>>, %arg6: memref<16x1xf32, #tpu.memory_space<vmem>>, %arg7: memref<1x16x16xf32, #tpu.memory_space<vmem>>, %arg8: memref<4x2xf32, #tpu.memory_space<vmem>>, %arg9: memref<8x2xf32, #tpu.memory_space<vmem>>) attributes {dimension_semantics = [#tpu.dimension_semantics<parallel>, #tpu.dimension_semantics<arbitrary>], iteration_bounds = array<i64: 2, 1>, scalar_prefetch = 0 : i64, scratch_operands = 2 : i64, tpu.core_type = #tpu.core_type<tc>, window_params = [{transform_indices = @transform_0, window_bounds = array<i64: 1, 4, 16>}, {pipeline_mode = #tpu.pipeline_mode<synchronous>, transform_indices = @transform_1, window_bounds = array<i64: 3, 8, 4>}, {pipeline_mode = #tpu.pipeline_mode<synchronous>, transform_indices = @transform_2, window_bounds = array<i64: 8, 1>}, {pipeline_mode = #tpu.pipeline_mode<synchronous>, transform_indices = @transform_3, window_bounds = array<i64: 3, 16, 8>}, {pipeline_mode = #tpu.pipeline_mode<synchronous>, transform_indices = @transform_4, window_bounds = array<i64: 16, 1>}, {transform_indices = @transform_5, window_bounds = array<i64: 1, 16, 16>}]} {
    %c0_i32 = arith.constant 0 : i32
    %0 = arith.cmpi eq, %arg1, %c0_i32 : i32
    %1 = arith.extui %0 : i1 to i32
    %c0_i32_0 = arith.constant 0 : i32
    %2 = arith.cmpi ne, %1, %c0_i32_0 : i32
    scf.if %2 {
      %cst_41 = arith.constant 0.000000e+00 : f32
      %58 = vector.broadcast %cst_41 : f32 to vector<4x2xf32>
      %c0_42 = arith.constant 0 : index
      %c0_43 = arith.constant 0 : index
      %59 = vector.load %arg8[%c0_42, %c0_43] : memref<4x2xf32, #tpu.memory_space<vmem>>, vector<4x2xf32>
      tpu.vector_store %arg8[%c0_42, %c0_43], %58 {strides = array<i32>} : memref<4x2xf32, #tpu.memory_space<vmem>>, vector<4x2xf32>,
      %cst_44 = arith.constant 0.000000e+00 : f32
      %60 = vector.broadcast %cst_44 : f32 to vector<8x2xf32>
      %c0_45 = arith.constant 0 : index
      %c0_46 = arith.constant 0 : index
      %61 = vector.load %arg9[%c0_45, %c0_46] : memref<8x2xf32, #tpu.memory_space<vmem>>, vector<8x2xf32>
      tpu.vector_store %arg9[%c0_45, %c0_46], %60 {strides = array<i32>} : memref<8x2xf32, #tpu.memory_space<vmem>>, vector<8x2xf32>,
    } else {
    }
    %c0 = arith.constant 0 : index
    %c0_1 = arith.constant 0 : index
    %c0_2 = arith.constant 0 : index
    %3 = vector.load %arg2[%c0, %c0_1, %c0_2] : memref<1x4x16xf32, #tpu.memory_space<vmem>>, vector<1x4x16xf32>
    %4 = vector.shape_cast %3 : vector<1x4x16xf32> to vector<4x16xf32>
    %c0_3 = arith.constant 0 : index
    %c0_4 = arith.constant 0 : index
    %5 = vector.load %arg8[%c0_3, %c0_4] : memref<4x2xf32, #tpu.memory_space<vmem>>, vector<4x2xf32>
    %6 = vector.extract_strided_slice %4 {offsets = [0, 14], sizes = [4, 2], strides = [1, 1]} : vector<4x16xf32> to vector<4x2xf32>
    %c0_5 = arith.constant 0 : index
    %c0_6 = arith.constant 0 : index
    %7 = vector.load %arg8[%c0_5, %c0_6] : memref<4x2xf32, #tpu.memory_space<vmem>>, vector<4x2xf32>
    tpu.vector_store %arg8[%c0_5, %c0_6], %6 {strides = array<i32>} : memref<4x2xf32, #tpu.memory_space<vmem>>, vector<4x2xf32>,
    %8 = vector.extract_strided_slice %5 {offsets = [0, 1], sizes = [4, 1], strides = [1, 1]} : vector<4x2xf32> to vector<4x1xf32>
    %9 = vector.extract_strided_slice %4 {offsets = [0, 0], sizes = [4, 15], strides = [1, 1]} : vector<4x16xf32> to vector<4x15xf32>
    %10 = tpu.concatenate %8, %9 in 1 : vector<4x1xf32>, vector<4x15xf32> -> vector<4x16xf32>
    %11 = vector.extract_strided_slice %4 {offsets = [0, 0], sizes = [4, 14], strides = [1, 1]} : vector<4x16xf32> to vector<4x14xf32>
    %12 = tpu.concatenate %5, %11 in 1 : vector<4x2xf32>, vector<4x14xf32> -> vector<4x16xf32>
    %c2 = arith.constant 2 : index
    %c0_7 = arith.constant 0 : index
    %c0_8 = arith.constant 0 : index
    %13 = vector.load %arg3[%c2, %c0_7, %c0_8] : memref<3x8x4xf32, #tpu.memory_space<vmem>>, vector<1x8x4xf32>
    %14 = vector.shape_cast %13 : vector<1x8x4xf32> to vector<8x4xf32>
    %cst = arith.constant dense<0.000000e+00> : vector<8x16xf32>
    %15 = tpu.matmul %14, %4, %cst {dimension_numbers = #tpu.dot_dimension_numbers<[1], [0], [0], [1], [0, 0, 1, 1], [], []>} : vector<8x4xf32>, vector<4x16xf32>, vector<8x16xf32> -> vector<8x16xf32>
    %c1 = arith.constant 1 : index
    %c0_9 = arith.constant 0 : index
    %c0_10 = arith.constant 0 : index
    %16 = vector.load %arg3[%c1, %c0_9, %c0_10] : memref<3x8x4xf32, #tpu.memory_space<vmem>>, vector<1x8x4xf32>
    %17 = vector.shape_cast %16 : vector<1x8x4xf32> to vector<8x4xf32>
    %cst_11 = arith.constant dense<0.000000e+00> : vector<8x16xf32>
    %18 = tpu.matmul %17, %10, %cst_11 {dimension_numbers = #tpu.dot_dimension_numbers<[1], [0], [0], [1], [0, 0, 1, 1], [], []>} : vector<8x4xf32>, vector<4x16xf32>, vector<8x16xf32> -> vector<8x16xf32>
    %19 = arith.addf %15, %18 : vector<8x16xf32>
    %c0_12 = arith.constant 0 : index
    %c0_13 = arith.constant 0 : index
    %c0_14 = arith.constant 0 : index
    %20 = vector.load %arg3[%c0_12, %c0_13, %c0_14] : memref<3x8x4xf32, #tpu.memory_space<vmem>>, vector<1x8x4xf32>
    %21 = vector.shape_cast %20 : vector<1x8x4xf32> to vector<8x4xf32>
    %cst_15 = arith.constant dense<0.000000e+00> : vector<8x16xf32>
    %22 = tpu.matmul %21, %12, %cst_15 {dimension_numbers = #tpu.dot_dimension_numbers<[1], [0], [0], [1], [0, 0, 1, 1], [], []>} : vector<8x4xf32>, vector<4x16xf32>, vector<8x16xf32> -> vector<8x16xf32>
    %23 = arith.addf %19, %22 : vector<8x16xf32>
    %c0_16 = arith.constant 0 : index
    %c0_17 = arith.constant 0 : index
    %24 = vector.load %arg4[%c0_16, %c0_17] : memref<8x1xf32, #tpu.memory_space<vmem>>, vector<8x1xf32>
    %25 = vector.broadcast %24 : vector<8x1xf32> to vector<8x16xf32>
    %26 = arith.addf %23, %25 : vector<8x16xf32>
    %cst_18 = arith.constant 2.000000e-01 : f32
    %27 = vector.broadcast %cst_18 : f32 to vector<8x16xf32>
    %28 = arith.mulf %27, %26 : vector<8x16xf32>
    %29 = arith.maximumf %26, %28 : vector<8x16xf32>
    %c0_19 = arith.constant 0 : index
    %c0_20 = arith.constant 0 : index
    %30 = vector.load %arg9[%c0_19, %c0_20] : memref<8x2xf32, #tpu.memory_space<vmem>>, vector<8x2xf32>
    %31 = vector.extract_strided_slice %29 {offsets = [0, 14], sizes = [8, 2], strides = [1, 1]} : vector<8x16xf32> to vector<8x2xf32>
    %c0_21 = arith.constant 0 : index
    %c0_22 = arith.constant 0 : index
    %32 = vector.load %arg9[%c0_21, %c0_22] : memref<8x2xf32, #tpu.memory_space<vmem>>, vector<8x2xf32>
    tpu.vector_store %arg9[%c0_21, %c0_22], %31 {strides = array<i32>} : memref<8x2xf32, #tpu.memory_space<vmem>>, vector<8x2xf32>,
    %33 = vector.extract_strided_slice %30 {offsets = [0, 1], sizes = [8, 1], strides = [1, 1]} : vector<8x2xf32> to vector<8x1xf32>
    %34 = vector.extract_strided_slice %29 {offsets = [0, 0], sizes = [8, 15], strides = [1, 1]} : vector<8x16xf32> to vector<8x15xf32>
    %35 = tpu.concatenate %33, %34 in 1 : vector<8x1xf32>, vector<8x15xf32> -> vector<8x16xf32>
    %36 = vector.extract_strided_slice %29 {offsets = [0, 0], sizes = [8, 14], strides = [1, 1]} : vector<8x16xf32> to vector<8x14xf32>
    %37 = tpu.concatenate %30, %36 in 1 : vector<8x2xf32>, vector<8x14xf32> -> vector<8x16xf32>
    %c2_23 = arith.constant 2 : index
    %c0_24 = arith.constant 0 : index
    %c0_25 = arith.constant 0 : index
    %38 = vector.load %arg5[%c2_23, %c0_24, %c0_25] : memref<3x16x8xf32, #tpu.memory_space<vmem>>, vector<1x16x8xf32>
    %39 = vector.shape_cast %38 : vector<1x16x8xf32> to vector<16x8xf32>
    %cst_26 = arith.constant dense<0.000000e+00> : vector<16x16xf32>
    %40 = tpu.matmul %39, %29, %cst_26 {dimension_numbers = #tpu.dot_dimension_numbers<[1], [0], [0], [1], [0, 0, 1, 1], [], []>} : vector<16x8xf32>, vector<8x16xf32>, vector<16x16xf32> -> vector<16x16xf32>
    %c1_27 = arith.constant 1 : index
    %c0_28 = arith.constant 0 : index
    %c0_29 = arith.constant 0 : index
    %41 = vector.load %arg5[%c1_27, %c0_28, %c0_29] : memref<3x16x8xf32, #tpu.memory_space<vmem>>, vector<1x16x8xf32>
    %42 = vector.shape_cast %41 : vector<1x16x8xf32> to vector<16x8xf32>
    %cst_30 = arith.constant dense<0.000000e+00> : vector<16x16xf32>
    %43 = tpu.matmul %42, %35, %cst_30 {dimension_numbers = #tpu.dot_dimension_numbers<[1], [0], [0], [1], [0, 0, 1, 1], [], []>} : vector<16x8xf32>, vector<8x16xf32>, vector<16x16xf32> -> vector<16x16xf32>
    %44 = arith.addf %40, %43 : vector<16x16xf32>
    %c0_31 = arith.constant 0 : index
    %c0_32 = arith.constant 0 : index
    %c0_33 = arith.constant 0 : index
    %45 = vector.load %arg5[%c0_31, %c0_32, %c0_33] : memref<3x16x8xf32, #tpu.memory_space<vmem>>, vector<1x16x8xf32>
    %46 = vector.shape_cast %45 : vector<1x16x8xf32> to vector<16x8xf32>
    %cst_34 = arith.constant dense<0.000000e+00> : vector<16x16xf32>
    %47 = tpu.matmul %46, %37, %cst_34 {dimension_numbers = #tpu.dot_dimension_numbers<[1], [0], [0], [1], [0, 0, 1, 1], [], []>} : vector<16x8xf32>, vector<8x16xf32>, vector<16x16xf32> -> vector<16x16xf32>
    %48 = arith.addf %44, %47 : vector<16x16xf32>
    %c0_35 = arith.constant 0 : index
    %c0_36 = arith.constant 0 : index
    %49 = vector.load %arg6[%c0_35, %c0_36] : memref<16x1xf32, #tpu.memory_space<vmem>>, vector<16x1xf32>
    %50 = vector.broadcast %49 : vector<16x1xf32> to vector<16x16xf32>
    %51 = arith.addf %48, %50 : vector<16x16xf32>
    %cst_37 = arith.constant 2.000000e-01 : f32
    %52 = vector.broadcast %cst_37 : f32 to vector<16x16xf32>
    %53 = arith.mulf %52, %51 : vector<16x16xf32>
    %54 = arith.maximumf %51, %53 : vector<16x16xf32>
    %c0_38 = arith.constant 0 : index
    %c0_39 = arith.constant 0 : index
    %c0_40 = arith.constant 0 : index
    %55 = vector.load %arg7[%c0_38, %c0_39, %c0_40] : memref<1x16x16xf32, #tpu.memory_space<vmem>>, vector<1x16x16xf32>
    %56 = vector.shape_cast %55 : vector<1x16x16xf32> to vector<16x16xf32>
    %57 = vector.shape_cast %54 : vector<16x16xf32> to vector<1x16x16xf32>
    tpu.vector_store %arg7[%c0_38, %c0_39, %c0_40], %57 {strides = array<i32>} : memref<1x16x16xf32, #tpu.memory_space<vmem>>, vector<1x16x16xf32>,
    return
  }
  func.func @transform_0(%arg0: i32, %arg1: i32) -> (i32, i32, i32) {
    %c0_i32 = arith.constant 0 : i32
    %c0_i32_0 = arith.constant 0 : i32
    return %arg0, %c0_i32, %arg1 : i32, i32, i32
  }
  func.func @transform_1(%arg0: i32, %arg1: i32) -> (i32, i32, i32) {
    %c0_i32 = arith.constant 0 : i32
    %c0_i32_0 = arith.constant 0 : i32
    %c0_i32_1 = arith.constant 0 : i32
    %c0_i32_2 = arith.constant 0 : i32
    return %c0_i32, %c0_i32_0, %c0_i32_1 : i32, i32, i32
  }
  func.func @transform_2(%arg0: i32, %arg1: i32) -> (i32, i32) {
    %c0_i32 = arith.constant 0 : i32
    %c0_i32_0 = arith.constant 0 : i32
    %c0_i32_1 = arith.constant 0 : i32
    return %c0_i32, %c0_i32_0 : i32, i32
  }
  func.func @transform_3(%arg0: i32, %arg1: i32) -> (i32, i32, i32) {
    %c0_i32 = arith.constant 0 : i32
    %c0_i32_0 = arith.constant 0 : i32
    %c0_i32_1 = arith.constant 0 : i32
    %c0_i32_2 = arith.constant 0 : i32
    return %c0_i32, %c0_i32_0, %c0_i32_1 : i32, i32, i32
  }
  func.func @transform_4(%arg0: i32, %arg1: i32) -> (i32, i32) {
    %c0_i32 = arith.constant 0 : i32
    %c0_i32_0 = arith.constant 0 : i32
    %c0_i32_1 = arith.constant 0 : i32
    return %c0_i32, %c0_i32_0 : i32, i32
  }
  func.func @transform_5(%arg0: i32, %arg1: i32) -> (i32, i32, i32) {
    %c0_i32 = arith.constant 0 : i32
    %c0_i32_0 = arith.constant 0 : i32
    return %arg0, %c0_i32, %arg1 : i32, i32, i32
  }
}

</mosaic_0001>

<bundles_post_ra>
// kernel: tpu_custom_call.1
= control target key start
LH: loop header
LB: loop body
LE: loop exit
PB: predicated region body
PF: predicated region fallthrough
CT: control target
= control target key end

     0   :  { %10 = vsyncpa [#allocation5], 0  ;;  %s1342_s0 = inlined_call_operand.vmem [shape: f32[2,4,16], index: 0, kind: input, shape index: {}]   ;;  %s1343_s1 = inlined_call_operand.vmem [shape: f32[3,8,4], index: 1, kind: input, shape index: {}]   ;;  %s1344_s2 = inlined_call_operand.vmem [shape: f32[8,1], index: 2, kind: input, shape index: {}]   ;;  %s1345_s3 = inlined_call_operand.vmem [shape: f32[3,16,8], index: 3, kind: input, shape index: {}]   ;;  %s1346_s4 = inlined_call_operand.vmem [shape: f32[16,1], index: 4, kind: input, shape index: {}]   ;;  %s1347_s5 = inlined_call_operand.hbm [shape: f32[2,16,16], index: 5, kind: output, shape index: {}]  }
   0x1   :  { %12 = vsyncpa [#allocation5 + $0x1], 0  ;;  %s1168_s18 = smov 0   ;;  %s1170_s19 = smov 0  }
   0x2   :  { %s1172_s20 = smov 0   ;;  %s1174_s21 = smov 0  }
   0x3   :  { %s1176_s22 = smov 0   ;;  %s1178_s23 = smov 0  }
   0x4 LB: > { %s902_s24 = sadd.s32 4294967295, %s1126_s23   ;;  %s903_s25 = sadd.s32 4294967294, %s1126_s23   ;;  %s1126_s23 = sphi %s1178_s23, %s18_s23   ;;  %s1122_s22 = sphi %s1176_s22, %s1354_s22   ;;  %s1118_s21 = sphi %s1174_s21, %s1353_s21   ;;  %s1114_s20 = sphi %s1172_s20, %s1352_s20   ;;  %s1110_s19 = sphi %s1170_s19, %s1351_s19   ;;  %s1106_s18 = sphi %s1168_s18, %s1350_s18  }
   0x5   : > { %s30_s26 = sadd.s32 1, %s1122_s22  ;;  %s151_s27 = sadd.s32 1, %s1114_s20 }
   0x6   : > { %p32_p0 = scmp.ge.s32.totalorder %s30_s26, 2  ;;  %p161_p1 = scmp.ne.s32.totalorder %s1114_s20, %s1110_s19 }
   0x7   : > { %p162_p2 = scmp.eq.s32.totalorder %s902_s24, 1  ;;  %p167_p3 = scmp.ne.s32.totalorder %s1110_s19, %s1106_s18 }
   0x8   : > { %s1356_s26 = smov (%p32_p0, %s30_s26), 0  ;;  %p168_p5 = scmp.eq.s32.totalorder %s903_s25, 1 }
   0x9   : > { %p1208_p4 = por %p162_p2, %p161_p1  ;;  %s146_s29 = ssub.s32 %s1122_s22, %s1356_s26 }
   0xa   : > { %p906_p6 = scmp.ge.s32.totalorder %s1126_s23, 1  ;;  %p149_p7 = scmp.eq.s32.totalorder %s146_s29, 0 }
   0xb   : > { %p1215_p8 = por %p168_p5, %p167_p3  ;;  %p208_p9 = scmp.lt.s32.totalorder %s1126_s23, 3 }
   0xc   : > { %s1221_s6 = scalar_select %p149_p7, %s1114_s20, %s151_s27  }
   0xd   : > { %p209_p10 = pnand %p906_p6, %p208_p9 }
   0xe   : > { %vm249_vm0 = vcmask (!%p209_p10), 11264   ;;  %p238_p11 = scmp.lt.s32.totalorder (!%p209_p10), %s1118_s21, 1  ;;  %v1128_v0 = vmov (!%p209_p10), 0.0   ;;  %vm1129_vm1 = vmmov (!%p209_p10), 0   ;;  %vm251_vm2 = vcmask (!%p209_p10), 15360   ;;  %s1130_s12 = smov (!%p209_p10), 2  }
   0xf   : > { %212 = sbr.rel (%p209_p10) target bundleno = 740 (0x2e4), region = 40  ;;  %250 = vst.msk [vmem:[#allocation2] sm:$0xf] (!%p209_p10), %vm249_vm0, %v1128_v0  ;;  %948 = vmatprep.subr.mxu0 (!%p209_p10), %v1128_v0  ;;  %950 = vmatprep.mubr.msk.f32.mxu0 (!%p209_p10), %vm1129_vm1, %v1128_v0  ;;  %s1131_s13 = smov (!%p209_p10), 127   ;;  %v510_v3 = vld [vmem:[%s1344_s2] sm:$0xff] (!%p209_p10)  ;;  %v1132_v4 = vmov (!%p209_p10), 0  }
  0x10   : > { %252 = vst.msk [vmem:[#allocation3] sm:$0xff] (!%p209_p10), %vm251_vm2, %v1128_v0  ;;  %1046 = vset.pattern.permute.xlu1 (!%p209_p10), %v1132_v4  ;;  %1047 = vset.pattern.permute.xlu0 (!%p209_p10), %v1132_v4  ;;  %s1133_s16 = smov (!%p209_p10), 1   ;;  %vm268_vm3 = vcmask (!%p209_p10), 7168   ;;  %vm283_vm4 = vcmask (!%p209_p10), 1043456   ;;  %v910_v7 = vld [vmem:[%s1343_s1 + $0x8] sm:$0xff] (!%p209_p10)  ;;  %vm279_vm5 = vcmask (!%p209_p10), 31744  }
  0x11   : > { %v909_v10 = vld [vmem:[%s1343_s1 + $0x10] sm:$0xff] (!%p209_p10)  ;;  %v432_v12 = vld [vmem:[%s1343_s1] sm:$0xff] (!%p209_p10)  ;;  %vm543_vm6 = vcmask (!%p209_p10), 64512   ;;  %v792_v28 = vld [vmem:[%s1346_s4 + $0x8] sm:$0xff] (!%p209_p10)  ;;  %s235_s10 = sand.u32 (!%p209_p10), 1, %s1110_s19   ;;  %s932_s15 = sshll.u32 (!%p209_p10), %s1118_s21, 8 }
  0x12   : > { %v919_v19 = vld [vmem:[%s1345_s3 + $0x10] sm:$0xff] (!%p209_p10)  ;;  %v791_v27 = vld [vmem:[%s1346_s4] sm:$0xff] (!%p209_p10)  ;;  %v920_v32 = vld [vmem:[%s1345_s3 + $0x18] sm:$0xff] (!%p209_p10)  ;;  %vm809_vm7 = vcmask (!%p209_p10), 130048   ;;  %s1296_s24 = scalar_lea.sflag (!%p209_p10), [#allocation5], %s235_s10  ;;  %s1135_s25 = smov (!%p209_p10), [#allocation4]  }
  0x13   : > { %965 = vmatprep.mubr.msk.f32.mxu1 (!%p209_p10), %vm543_vm6, %v919_v19  ;;  %v917_v34 = vld [vmem:[%s1345_s3 + $0x20] sm:$0xff] (!%p209_p10)  ;;  %v918_v36 = vld [vmem:[%s1345_s3 + $0x28] sm:$0xff] (!%p209_p10)  ;;  %s1052_s27 = sshll.u32 (!%p209_p10), %s1135_s25, 4  ;;  %s1053_s27 = int_to_ptr.vmem [resolvable:$false] %s1052_s27 }
  0x14   : > { %v706_v37 = vld [vmem:[%s1345_s3] sm:$0xff] (!%p209_p10)  ;;  %v707_v39 = vld [vmem:[%s1345_s3 + $0x8] sm:$0xff] (!%p209_p10)  ;;  %s1054_s29 = scalar_lea.vmem (!%p209_p10), %s1053_s27, 512 }
  0x16   : > { %s239_s7 = scalar_select %p238_p11, %s1118_s21, 1  ;;  %v254_v2 = vld [vmem:[#allocation2] sm:$0xf] }
  0x17   : > { %262 = vrot.lane.b32.xlu0 %v254_v2, %s1131_s13  ;;  %v519_v13 = vld [vmem:[#allocation3] sm:$0xff] }
  0x18   : > { %s908_s8 = sshll.u32 %s239_s7, 2 }
  0x19   : > { %s244_s11 = scalar_lea.vmem %s1342_s0, %s908_s8 }
  0x1a   : > { %v253_v1 = vld [vmem:[%s244_s11] sm:$0xf]  ;;  %s907_s11 = sshll.u32 %s235_s10, 4 }
  0x1b   : > { %270 = vrot.lane.b32.xlu1 %v253_v1, %s1130_s12  ;;  %265 = vrot.lane.b32.xlu0 %v253_v1, %s1133_s16 }
  0x1f   : > { %513 = vperm.xlu1 %1046, %v510_v3   ;;  %526 = vrot.lane.b32.xlu0 %v519_v13, %s1131_s13  ;;  %s1134_s13 = smov 114  }
  0x89   : > { %v263_v5 = vpop.permute.xlu0 %262 }
  0x8d   : > { %v266_v6 = vpop.permute.xlu0 %265  ;;  %v271_v9 = vpop.permute.xlu1 %270 }
  0x8e   : > { %v269_v8 = vsel %vm268_vm3, %v263_v5, %v266_v6  ;;  %v274_v11 = vsel %vm251_vm2, %v254_v2, %v271_v9 }
  0x8f   : > { %949 = vmatpush3.msk.msra.mxu0 %vm283_vm4, %v269_v8 }
  0x90   : > { %951 = vmatmul.mubr.msk.f32.vlgmr.msra.gmra.mrb[0].mxu0 %vm279_vm5, %v910_v7  ;;  %953 = vmatprep.subr.mxu0 %v1128_v0 }
  0x91   : > { %954 = vmatpush3.msk.msra.mxu0 %vm283_vm4, %v253_v1  ;;  %955 = vmatprep.mubr.msk.f32.mxu0 %vm1129_vm1, %v1128_v0  ;;  %v527_v29 = vpop.permute.xlu0 %526 }
  0x92   : > { %958 = vmatprep.subr.mxu0 %v1128_v0 }
  0x94   : > { %956 = vmatmul.mubr.msk.f32.vlgmr.msra.gmra.mrb[2].mxu0 %vm279_vm5, %v909_v10 }
  0x95   : > { %959 = vmatpush3.msk.msra.mxu0 %vm283_vm4, %v274_v11  ;;  %960 = vmatprep.mubr.msk.f32.mxu0 %vm1129_vm1, %v1128_v0 }
  0x98   : > { %961 = vmatmul.mubr.msk.f32.vlgmr.msra.gmra.mrb[4].mxu0 %vm279_vm5, %v432_v12 }
  0x9e   : > { %v514_v21 = vpop.permute.xlu1 %513 }
 0x163   : > { %v353_v14 = vpop.f32.mrb[0].mxu0 }
 0x164   : > { %v952_v15 = vpop.f32.mrb[1].mxu0 }
 0x167   : > { %v428_v16 = vpop.f32.mrb[2].mxu0 }
 0x168   : > { %v429_v17 = vadd.f32 %v428_v16, %v353_v14  ;;  %v957_v18 = vpop.f32.mrb[3].mxu0 }
 0x16b   : > { %v505_v20 = vpop.f32.mrb[4].mxu0 }
 0x16c   : > { %v509_v22 = vadd.f32 %v505_v20, %v429_v17  ;;  %v962_v23 = vpop.f32.mrb[5].mxu0 }
 0x16e   : > { %v516_v24 = vadd.f32 %v514_v21, %v509_v22 }
 0x170   : > { %v517_v25 = vmul.f32 0.2, %v516_v24 }
 0x172   : > { %v518_v26 = vmax.f32 %v516_v24, %v517_v25 }
 0x174   : > { %533 = vrot.lane.b32.xlu0 %v518_v26, %s1130_s12  ;;  %529 = vrot.lane.b32.xlu1 %v518_v26, %s1133_s16  ;;  %s1292_s16 = scalar_lea.hbm %s1347_s5, %s932_s15 }
 0x178   : > { %795 = vperm.xlu1 %1046, %v791_v27   ;;  %800 = vperm.xlu0 %1047, %v792_v28  }
 0x17c   : > { %256 = vrot.lane.b32.xlu1 %v253_v1, %s1134_s13 }
 0x180   : > { %521 = vrot.lane.b32.xlu1 %v518_v26, %s1134_s13  ;;  %s237_s13 = scalar_lea.vmem [#allocation4], %s907_s11 }
 0x181   : > { %s827_s14 = sshll.u32 %s237_s13, 4  ;;  %s1294_s14 = int_to_ptr.vmem [resolvable:$true] %s827_s14 }
 0x182   : > { %s1048_s21 = scalar_lea.vmem %s1294_s14, 256  ;;  %p1055_p1 = scmp.lt.s32.totalorder %s1294_s14, %s1053_s27 }
 0x183   : > { %p1049_p12 = scmp.ne.s32.totalorder %s1294_s14, %s1048_s21  ;;  %p1056_p2 = scmp.lt.s32.totalorder %s1054_s29, %s1048_s21 }
 0x185   : > { %p1050_p13 = pnand %p1049_p12, %p1208_p4  ;;  %p1057_p3 = por %p1056_p2, %p1055_p1 }
 0x187   : > { %p1051_p0 = pneg %p1050_p13 }
 0x189   : > { %p1058_p5 = pnand %p1057_p3, %p1051_p0 }
 0x1e6   : > { %v530_v30 = vpop.permute.xlu1 %529  ;;  %v534_v33 = vpop.permute.xlu0 %533 }
 0x1e7   : > { %v532_v31 = vsel %vm268_vm3, %v527_v29, %v530_v30  ;;  %v536_v35 = vsel %vm251_vm2, %v519_v13, %v534_v33 }
 0x1e8   : > { %963 = vmatprep.subr.mxu1 %v532_v31 }
 0x1e9   : > { %964 = vmatpush3.msra.mxu1 %v532_v31 }
 0x1ea   : > { %966 = vmatmul.mubr.msk.f32.vlgmr.msra.gmra.mrb[0].mxu1 %vm543_vm6, %v920_v32  ;;  %968 = vmatprep.subr.mxu1 %v518_v26 }
 0x1eb   : > { %969 = vmatpush3.msra.mxu1 %v518_v26  ;;  %970 = vmatprep.mubr.msk.f32.mxu1 %vm543_vm6, %v917_v34 }
 0x1ec   : > { %973 = vmatprep.subr.mxu1 %v536_v35 }
 0x1f2   : > { %971 = vmatmul.mubr.msk.f32.vlgmr.msra.gmra.mrb[0].mxu1 %vm543_vm6, %v918_v36 }
 0x1f3   : > { %974 = vmatpush3.msra.mxu1 %v536_v35  ;;  %975 = vmatprep.mubr.msk.f32.mxu1 %vm543_vm6, %v706_v37 }
 0x1f7   : > { %v796_v38 = vpop.permute.xlu1 %795  ;;  %v801_v42 = vpop.permute.xlu0 %800 }
 0x1fa   : > { %976 = vmatmul.mubr.msk.f32.vlgmr.msra.gmra.mrb[0].mxu1 %vm543_vm6, %v707_v39 }
 0x1fb   : > { %v257_v40 = vpop.permute.xlu1 %256 }
 0x1fc   : > { %260 = vst.msk [vmem:[#allocation2] sm:$0xf] %vm249_vm0, %v257_v40 }
 0x1ff   : > { %v522_v41 = vpop.permute.xlu1 %521 }
 0x200   : > { %524 = vst.msk [vmem:[#allocation3] sm:$0xff] %vm251_vm2, %v522_v41 }
 0x2cd   : > { %v977_v43 = vpop.f32.mrb[0].mxu1 }
 0x2ce   : > { %v804_v44 = vadd.f32 %v977_v43, %v801_v42  ;;  %v780_v45 = vpop.f32.mrb[1].mxu1 }
 0x2cf   : > { %v803_v46 = vadd.f32 %v796_v38, %v780_v45 }
 0x2d0   : > { %v806_v47 = vmul.f32 0.2, %v804_v44 }
 0x2d1   : > { %v805_v48 = vmul.f32 0.2, %v803_v46 }
 0x2d2   : > { %v808_v49 = vmax.f32 %v804_v44, %v806_v47 }
 0x2d3   : > { %v807_v50 = vmax.f32 %v803_v46, %v805_v48 }
 0x2d4   : > { %811 = vst.msk [vmem:[%s237_s13 + $0x8] sm:$0xff] %vm809_vm7, %v808_v49 }
 0x2d5   : > { %810 = vst.msk [vmem:[%s237_s13] sm:$0xff] %vm809_vm7, %v807_v50 }
 0x2d6   : > { %1061 = shalt.err (!%p1058_p5)
}
 0x2d7   : > { %s1062_s7 = scalar_lea.hbm %s1292_s16, 256  ;;  %s1066_s10 = scalar_lea.hbm %s1347_s5, 512 }
 0x2d8   : > { %p1063_p6 = scmp.ne.s32.totalorder %s1292_s16, %s1062_s7  ;;  %p1067_p10 = scmp.lt.u32.totalorder %s1292_s16, %s1347_s5 }
 0x2d9   : > { %p1068_p11 = scmp.lt.u32.totalorder %s1066_s10, %s1062_s7  ;;  %p1070_p13 = scmp.lt.u32.totalorder %s1062_s7, %s1292_s16 }
 0x2da   : > { %p1064_p7 = pnand %p1063_p6, %p1208_p4 }
 0x2db   : > { %p1069_p12 = por %p1068_p11, %p1067_p10 }
 0x2dc   : > { %p1065_p9 = pneg %p1064_p7 }
 0x2dd   : > { %p1071_p0 = por %p1070_p13, %p1069_p12 }
 0x2df   : > { %p1072_p1 = pnand %p1071_p0, %p1065_p9 }
 0x2e1   : > { %1075 = shalt.err (!%p1072_p1)
}
 0x2e2   : > { %s1136_s15 = smov 128   ;;  %s1137_s12 = smov 8  }
 0x2e3   : > { %982 = dma.vmem_to_hbm [thread:$0]  (%p1208_p4), %s1294_s14, 256, %s1292_s16, %s1296_s24, %s1136_s15, %s1136_s15, %s1137_s12  }
 0x2e4 PF: > { %p988_p2 = scmp.ge.s32.totalorder %s1126_s23, 2  ;;  %s842_s17 = sand.u32 1, %s1106_s18  }
 0x2e5   : > { %s843_s21 = scalar_lea.sflag [#allocation5], %s842_s17 }
 0x2e6   : > { %p985_p3 = pnand %p988_p2, %p1215_p8 }
 0x2e8   : > { %1101 = dma.done.wait (!%p985_p3), %s843_s21, 256  }
 0x2e9   : > { %1103 = vsyncadd (!%p985_p3), %s843_s21, 4294967040  ;;  %s18_s23 = sadd.s32 1, %s1126_s23   ;;  %s1350_s18 = smov %s1110_s19 }
 0x2ea   : > { %p15_p5 = scmp.ge.s32.totalorder %s18_s23, 4   ;;  %s1351_s19 = smov %s1114_s20 }
 0x2eb   : > { %s1352_s20 = smov %s1221_s6  ;;  %s1353_s21 = smov %s1122_s22 }
 0x2ec   : > { %s1354_s22 = smov %s1356_s26  ;;  %17 = sbr.rel (!%p15_p5) target bundleno = 4 (0x4), region = 83 }
 0x2f3   :  { %848 = vsyncpa [#allocation5], 1 }
 0x2f4   :  { %850 = vsyncpa [#allocation5 + $0x1], 1 }

</bundles_post_ra>
